<compile_context>
chip_gen: v5e
topology: v5e:2x2
jax: 0.10.0
libtpu: 0.0.40
codegen_flags: <defaults>
</compile_context>

<pallas_src>
import jax
import jax.numpy as jnp
from jax.experimental import pallas as pl
from jax.experimental.pallas import tpu as pltpu

HIDDEN = 200        # fixed by the module definition (nn.Linear(input_size, 200))
HIDDEN_PAD = 256    # zero-padded hidden width: 2x128 lanes (one clean MXU tile)
LANE = 128
SUBLANE = 8


def _round_up(n, m):
    return ((n + m - 1) // m) * m


# --------------------------------------------------------------------------- kernel
def _actor_kernel(x_ref, w1_ref, b1_ref, w2_ref, b2_ref, o_ref):
    # x may arrive as f32 (direct, unpadded input) or bf16 (host-padded); cast in-kernel
    # so no separate XLA pad/cast pass over x is needed in the aligned case.
    x = x_ref[...]
    if x.dtype != jnp.bfloat16:
        x = x.astype(jnp.bfloat16)

    # ---- fc1 + ReLU: bf16 MXU matmul, f32 accumulation; bias + ReLU in f32 ----
    h = jnp.dot(x, w1_ref[...], preferred_element_type=jnp.float32)
    h = jnp.maximum(h + b1_ref[...], 0.0)                 # (B, 256) + (1, 256)

    # ---- output layer + sigmoid: cast activations to bf16 for a native MXU pass ----
    logits = jnp.dot(h.astype(jnp.bfloat16), w2_ref[...],
                     preferred_element_type=jnp.float32)
    o_ref[...] = jax.nn.sigmoid(logits + b2_ref[...]).astype(o_ref.dtype)


# ------------------------------------------------------------------ parameter packing
def prepare_actor_params(w1, b1, w2, b2):
    """One-time (outside the kernel) zero-pad to aligned shapes + cast weights to bf16.

    w1: (input_size, 200); b1: (200,); w2: (200, action_size); b2: (action_size,).
    """
    in_size = w1.shape[0]
    action_size = w2.shape[1]
    in_pad = _round_up(in_size, LANE)
    a_pad = _round_up(action_size, LANE)

    w1p = jnp.zeros((in_pad, HIDDEN_PAD), jnp.bfloat16)
    w1p = w1p.at[:in_size, :HIDDEN].set(w1.astype(jnp.bfloat16))
    b1p = jnp.zeros((1, HIDDEN_PAD), jnp.float32).at[:, :HIDDEN].set(b1)

    w2p = jnp.zeros((HIDDEN_PAD, a_pad), jnp.bfloat16)
    w2p = w2p.at[:HIDDEN, :action_size].set(w2.astype(jnp.bfloat16))
    b2p = jnp.zeros((1, a_pad), jnp.float32).at[:, :action_size].set(b2)

    return dict(w1=w1p, b1=b1p, w2=w2p, b2=b2p,
                in_size=in_size, action_size=action_size)


# ------------------------------------------------------------------- sizing heuristics
def _vmem_capacity_bytes():
    try:
        return int(pltpu.get_tpu_info().vmem_capacity_bytes)
    except Exception:
        return 64 * 1024 * 1024  # conservative (v7x-sized) fallback


def _estimate_vmem_bytes(rb, in_pad, a_pad, x_itemsize):
    x_tiles = rb * in_pad * x_itemsize * 2          # double-buffered x tile
    x_cast = rb * in_pad * 2                        # in-kernel bf16 copy of x
    w1 = in_pad * HIDDEN_PAD * 2 * 2                # bf16, 2 buffers
    w2 = HIDDEN_PAD * a_pad * 2 * 2
    biases = (HIDDEN_PAD + a_pad) * 4 * 2
    out = rb * a_pad * 2 * 2                        # bf16 output, 2 buffers
    h = rb * HIDDEN_PAD * 4                         # f32 hidden activations
    return x_tiles + x_cast + w1 + w2 + biases + out + h


def _pick_row_block(B, in_pad, a_pad, x_itemsize, row_block, budget):
    # At least 2 grid steps so ("parallel",) feeds both v7x TensorCores.
    rb = min(row_block, _round_up(-(-B // 2), SUBLANE))
    rb = max(SUBLANE, _round_up(rb, SUBLANE))
    while rb > SUBLANE and _estimate_vmem_bytes(rb, in_pad, a_pad, x_itemsize) > budget:
        rb = max(SUBLANE, _round_up(rb // 2, SUBLANE))
    return rb


def _cost_estimate(B, in_pad, a_pad, x_itemsize):
    flops = 2 * B * (in_pad * HIDDEN_PAD + HIDDEN_PAD * a_pad)
    transcendentals = B * a_pad                     # sigmoid -> exp
    bytes_accessed = (B * in_pad * x_itemsize                   # x read
                      + in_pad * HIDDEN_PAD * 2                 # w1 (bf16)
                      + HIDDEN_PAD * a_pad * 2                  # w2 (bf16)
                      + (HIDDEN_PAD + a_pad) * 4                # biases
                      + B * a_pad * 2)                          # bf16 output write
    return pl.CostEstimate(flops=int(flops),
                           transcendentals=int(transcendentals),
                           bytes_accessed=int(bytes_accessed))


# ---------------------------------------------------------------------------- forward
def actor_forward(x, params, *, row_block=512, small_batch_threshold=128):
    """x: (B, input_size) f32/bf16 -> (B, action_size) f32 action probabilities."""
    w1p, b1p, w2p, b2p = params["w1"], params["b1"], params["w2"], params["b2"]
    in_size, action_size = params["in_size"], params["action_size"]
    B = x.shape[0]
    in_pad = w1p.shape[0]
    a_pad = w2p.shape[1]

    # Only pad/cast x on the host when the feature dim is not lane-aligned; otherwise
    # hand x straight to the kernel (bf16 cast happens in-kernel, no extra HBM pass).
    if in_size == in_pad:
        xk = x
    else:
        xk = jnp.zeros((B, in_pad), jnp.bfloat16)
        xk = xk.at[:, :in_size].set(x.astype(jnp.bfloat16))
    x_itemsize = jnp.dtype(xk.dtype).itemsize

    out_dtype = jnp.bfloat16  # padded-lane bf16 writeback; sliced+upcast on return
    cost = _cost_estimate(B, in_pad, a_pad, x_itemsize)

    if B <= small_batch_threshold:
        # No grid: single invocation, every operand is one VMEM-resident block.
        out = pl.pallas_call(
            _actor_kernel,
            out_shape=jax.ShapeDtypeStruct((B, a_pad), out_dtype),
            in_specs=[pl.BlockSpec(memory_space=pltpu.MemorySpace.VMEM)] * 5,
            out_specs=pl.BlockSpec(memory_space=pltpu.MemorySpace.VMEM),
            cost_estimate=cost,
        )(xk, w1p, b1p, w2p, b2p)
    else:
        cap = _vmem_capacity_bytes()
        budget = int(cap * 0.45)          # keep double-buffered footprint well under VMEM
        rb = _pick_row_block(B, in_pad, a_pad, x_itemsize, row_block, budget)
        footprint = _estimate_vmem_bytes(rb, in_pad, a_pad, x_itemsize)
        vmem_limit = int(min(cap * 0.9, max(32 * 1024 * 1024, footprint * 1.5)))
        grid = pl.cdiv(B, rb)             # ragged last block; no full-tile batch padding

        out = pl.pallas_call(
            _actor_kernel,
            out_shape=jax.ShapeDtypeStruct((B, a_pad), out_dtype),
            grid=(grid,),
            in_specs=[
                pl.BlockSpec((rb, in_pad), lambda i: (i, 0)),
                pl.BlockSpec((in_pad, HIDDEN_PAD), lambda i: (0, 0)),
                pl.BlockSpec((1, HIDDEN_PAD), lambda i: (0, 0)),
                pl.BlockSpec((HIDDEN_PAD, a_pad), lambda i: (0, 0)),
                pl.BlockSpec((1, a_pad), lambda i: (0, 0)),
            ],
            out_specs=pl.BlockSpec((rb, a_pad), lambda i: (i, 0)),
            compiler_params=pltpu.CompilerParams(
                dimension_semantics=("parallel",),   # both v7x TCs split the row blocks
                vmem_limit_bytes=vmem_limit),
            cost_estimate=cost,
        )(xk, w1p, b1p, w2p, b2p)

    return out[:B, :action_size].astype(jnp.float32)


# --------------------------------------------------------------------- init & references
def init_actor_params(key, input_size, action_size):
    """Deterministic init mimicking nn.Linear's U(-1/sqrt(fan_in), 1/sqrt(fan_in))."""
    k1, k2, k3, k4 = jax.random.split(key, 4)
    bound1 = 1.0 / jnp.sqrt(jnp.float32(input_size))
    bound2 = 1.0 / jnp.sqrt(jnp.float32(HIDDEN))
    w1 = jax.random.uniform(k1, (input_size, HIDDEN), jnp.float32, -bound1, bound1)
    b1 = jax.random.uniform(k2, (HIDDEN,), jnp.float32, -bound1, bound1)
    w2 = jax.random.uniform(k3, (HIDDEN, action_size), jnp.float32, -bound2, bound2)
    b2 = jax.random.uniform(k4, (action_size,), jnp.float32, -bound2, bound2)
    return w1, b1, w2, b2


def _ref_f32(x, w1, b1, w2, b2):
    return jax.nn.sigmoid(jnp.maximum(x @ w1 + b1, 0.0) @ w2 + b2)


def _ref_bf16(x, w1, b1, w2, b2):
    # Mimics the kernel's bf16-inputs / f32-accumulation numerics (f32 output).
    hp = jax.lax.Precision.HIGHEST
    xb = x.astype(jnp.bfloat16).astype(jnp.float32)
    w1b = w1.astype(jnp.bfloat16).astype(jnp.float32)
    w2b = w2.astype(jnp.bfloat16).astype(jnp.float32)
    h = jnp.maximum(jnp.dot(xb, w1b, precision=hp) + b1, 0.0)
    hb = h.astype(jnp.bfloat16).astype(jnp.float32)
    return jax.nn.sigmoid(jnp.dot(hb, w2b, precision=hp) + b2)


if __name__ == "__main__":
    # Small shapes consistent with the module: batch=4, input_size=128, action_size=2.
    B, INPUT_SIZE, ACTION_SIZE = 4, 128, 2

    key = jax.random.PRNGKey(0)
    kx, kp, kb = jax.random.split(key, 3)
    x = jax.random.normal(kx, (B, INPUT_SIZE), dtype=jnp.float32)
    w1, b1, w2, b2 = init_actor_params(kp, INPUT_SIZE, ACTION_SIZE)
    params = prepare_actor_params(w1, b1, w2, b2)

    # --- small-batch (grid-less) path, x passed directly (no host pad/cast) ---
    out = jax.block_until_ready(actor_forward(x, params))
    assert out.shape == (B, ACTION_SIZE)
    assert jnp.allclose(out, _ref_bf16(x, w1, b1, w2, b2), atol=5e-3, rtol=1e-2)
    assert jnp.allclose(out, _ref_f32(x, w1, b1, w2, b2), atol=3e-2, rtol=3e-2)

    # --- batched (row-tiled, "parallel") path with a ragged last block (B=300) ---
    xb_big = jax.random.normal(kb, (300, INPUT_SIZE), dtype=jnp.float32)
    out_big = jax.block_until_ready(actor_forward(xb_big, params))
    assert out_big.shape == (300, ACTION_SIZE)
    assert jnp.allclose(out_big, _ref_bf16(xb_big, w1, b1, w2, b2), atol=5e-3, rtol=1e-2)
    assert jnp.allclose(out_big, _ref_f32(xb_big, w1, b1, w2, b2), atol=3e-2, rtol=3e-2)

    print("KERNEL_OK")
</pallas_src>

<mosaic_0001>
module attributes {stable_mosaic.version = 11 : i64} {
  func.func @_actor_kernel(%arg0: memref<4x128xf32, #tpu.memory_space<vmem>>, %arg1: memref<128x256xbf16, #tpu.memory_space<vmem>>, %arg2: memref<1x256xf32, #tpu.memory_space<vmem>>, %arg3: memref<256x128xbf16, #tpu.memory_space<vmem>>, %arg4: memref<1x128xf32, #tpu.memory_space<vmem>>, %arg5: memref<4x128xbf16, #tpu.memory_space<vmem>>) attributes {dimension_semantics = [], scalar_prefetch = 0 : i64, scratch_operands = 0 : i64, tpu.core_type = #tpu.core_type<tc>} {
    %c0 = arith.constant 0 : index
    %c0_0 = arith.constant 0 : index
    %0 = vector.load %arg0[%c0, %c0_0] : memref<4x128xf32, #tpu.memory_space<vmem>>, vector<4x128xf32>
    %1 = arith.truncf %0 : vector<4x128xf32> to vector<4x128xbf16>
    %c0_1 = arith.constant 0 : index
    %c0_2 = arith.constant 0 : index
    %2 = vector.load %arg1[%c0_1, %c0_2] : memref<128x256xbf16, #tpu.memory_space<vmem>>, vector<128x256xbf16>
    %cst = arith.constant dense<0.000000e+00> : vector<4x256xf32>
    %3 = tpu.matmul %1, %2, %cst {dimension_numbers = #tpu.dot_dimension_numbers<[1], [0], [0], [1], [0, 0, 1, 1], [], []>} : vector<4x128xbf16>, vector<128x256xbf16>, vector<4x256xf32> -> vector<4x256xf32>
    %c0_3 = arith.constant 0 : index
    %c0_4 = arith.constant 0 : index
    %4 = vector.load %arg2[%c0_3, %c0_4] : memref<1x256xf32, #tpu.memory_space<vmem>>, vector<1x256xf32>
    %5 = vector.broadcast %4 : vector<1x256xf32> to vector<4x256xf32>
    %6 = arith.addf %3, %5 : vector<4x256xf32>
    %cst_5 = arith.constant 0.000000e+00 : f32
    %7 = vector.broadcast %cst_5 : f32 to vector<4x256xf32>
    %8 = arith.maximumf %6, %7 : vector<4x256xf32>
    %9 = arith.truncf %8 : vector<4x256xf32> to vector<4x256xbf16>
    %c0_6 = arith.constant 0 : index
    %c0_7 = arith.constant 0 : index
    %10 = vector.load %arg3[%c0_6, %c0_7] : memref<256x128xbf16, #tpu.memory_space<vmem>>, vector<256x128xbf16>
    %cst_8 = arith.constant dense<0.000000e+00> : vector<4x128xf32>
    %11 = tpu.matmul %9, %10, %cst_8 {dimension_numbers = #tpu.dot_dimension_numbers<[1], [0], [0], [1], [0, 0, 1, 1], [], []>} : vector<4x256xbf16>, vector<256x128xbf16>, vector<4x128xf32> -> vector<4x128xf32>
    %c0_9 = arith.constant 0 : index
    %c0_10 = arith.constant 0 : index
    %12 = vector.load %arg4[%c0_9, %c0_10] : memref<1x128xf32, #tpu.memory_space<vmem>>, vector<1x128xf32>
    %13 = vector.broadcast %12 : vector<1x128xf32> to vector<4x128xf32>
    %14 = arith.addf %11, %13 : vector<4x128xf32>
    %15 = arith.negf %14 : vector<4x128xf32>
    %16 = math.exp %15 : vector<4x128xf32>
    %cst_11 = arith.constant 1.000000e+00 : f32
    %17 = vector.broadcast %cst_11 : f32 to vector<4x128xf32>
    %18 = arith.addf %17, %16 : vector<4x128xf32>
    %19 = arith.divf %17, %18 : vector<4x128xf32>
    %20 = arith.truncf %19 : vector<4x128xf32> to vector<4x128xbf16>
    %c0_12 = arith.constant 0 : index
    %c0_13 = arith.constant 0 : index
    %21 = vector.load %arg5[%c0_12, %c0_13] : memref<4x128xbf16, #tpu.memory_space<vmem>>, vector<4x128xbf16>
    tpu.vector_store %arg5[%c0_12, %c0_13], %20 {strides = array<i32>} : memref<4x128xbf16, #tpu.memory_space<vmem>>, vector<4x128xbf16>,
    return
  }
}

</mosaic_0001>

<bundles_post_ra>
// kernel: tpu_custom_call.1
= control target key start
LH: loop header
LB: loop body
LE: loop exit
PB: predicated region body
PF: predicated region fallthrough
CT: control target
= control target key end

     0   :  { %10 = vsyncpa [#allocation3], 0  ;;  %s772_s0 = inlined_call_operand.hbm [shape: f32[4,128], index: 0, kind: input, shape index: {}]   ;;  %s773_s1 = inlined_call_operand.hbm [shape: bf16[128,256], index: 1, kind: input, shape index: {}]   ;;  %s774_s2 = inlined_call_operand.hbm [shape: f32[1,256], index: 2, kind: input, shape index: {}]   ;;  %s775_s3 = inlined_call_operand.hbm [shape: bf16[256,128], index: 3, kind: input, shape index: {}]   ;;  %s776_s4 = inlined_call_operand.vmem [shape: f32[1,128], index: 4, kind: input, shape index: {}]   ;;  %s777_s5 = inlined_call_operand.hbm [shape: bf16[4,128], index: 5, kind: output, shape index: {}]  }
   0x1   :  { %11 = vsyncpa [#allocation6], 0 }
   0x2   :  { %12 = vsyncpa [#allocation9], 0  ;;  %s29_s20 = sshll.u32 %s773_s1, 4  ;;  %s30_s20 = int_to_ptr.hbm [resolvable:$true] %s29_s20 }
   0x3   :  { %13 = vsyncpa [#allocation4], 0  ;;  %s715_s21 = smov [#allocation5]   ;;  %s19_s25 = sshll.u32 %s772_s0, 4  ;;  %s20_s25 = int_to_ptr.hbm [resolvable:$true] %s19_s25 }
   0x4   :  { %s31_s22 = sshll.u32 %s715_s21, 4  ;;  %s716_s26 = smov 128   ;;  %s32_s22 = int_to_ptr.vmem [resolvable:$true] %s31_s22 }
   0x5   :  { %s717_s27 = smov 8   ;;  %s718_s28 = smov [#allocation2]  }
   0x6   :  { %37 = dma.hbm_to_vmem [thread:$0]  %s30_s20, 2048, %s32_s22, [#allocation6], %s716_s26, %s716_s26, %s717_s27  }
   0x7   :  { %s21_s29 = sshll.u32 %s718_s28, 4  ;;  %s43_s7 = sshll.u32 %s774_s2, 4  ;;  %s22_s29 = int_to_ptr.vmem [resolvable:$true] %s21_s29  ;;  %s44_s7 = int_to_ptr.hbm [resolvable:$true] %s43_s7 }
   0x8   :  { %24 = dma.hbm_to_vmem [thread:$0]  %s20_s25, 64, %s22_s29, [#allocation3]  }
   0x9   :  { %s53_s9 = sshll.u32 %s775_s3, 4  ;;  %s719_s10 = smov [#allocation7]   ;;  %s54_s9 = int_to_ptr.hbm [resolvable:$true] %s53_s9 }
   0xa   :  { %s45_s11 = sshll.u32 %s719_s10, 4  ;;  %s720_s0 = smov [#allocation8]   ;;  %s46_s11 = int_to_ptr.vmem [resolvable:$true] %s45_s11 }
   0xb   :  { %48 = dma.hbm_to_vmem [thread:$0]  %s44_s7, 32, %s46_s11, [#allocation6]  }
   0xc   :  { %s55_s12 = sshll.u32 %s720_s0, 4  ;;  %s721_s13 = smov 64   ;;  %s56_s12 = int_to_ptr.vmem [resolvable:$true] %s55_s12 }
   0xd   :  { %s722_s14 = smov 4  }
   0xe   :  { %61 = dma.hbm_to_vmem [thread:$0]  %s54_s9, 2048, %s56_s12, [#allocation9], %s721_s13, %s721_s13, %s722_s14  }
   0xf   :  { %707 = dma.done.wait [#allocation3], 64  }
  0x10   :  { %708 = vsyncadd [#allocation3], 4294967232 }
  0x11   :  { %709 = dma.done.wait [#allocation6], 2080  }
  0x12   :  { %710 = vsyncadd [#allocation6], 4294965216 }
  0x13   :  { %711 = dma.done.wait [#allocation9], 2048  }
  0x14   :  { %712 = vsyncadd [#allocation9], 4294965248  ;;  %v470_v0 = vld [vmem:[#allocation5 + $0x70] sm:$0xf]  ;;  %v556_v1 = vld [vmem:[#allocation5 + $0x74] sm:$0xf0] }
  0x15   :  { %v555_v2 = vld [vmem:[#allocation5 + $0x74] sm:$0xf]  ;;  %v471_v3 = vor.u32 %v556_v1, %v470_v0  ;;  %v472_v4 = vld [vmem:[#allocation5 + $0x78] sm:$0xf0]  ;;  %v462_v5 = vld [vmem:[#allocation5 + $0x60] sm:$0xf] }
  0x16   :  { %v554_v6 = vld [vmem:[#allocation5 + $0x64] sm:$0xf0]  ;;  %v475_v7 = vor.u32 %v555_v2, %v472_v4  ;;  %v553_v8 = vld [vmem:[#allocation5 + $0x64] sm:$0xf]  ;;  %v464_v9 = vld [vmem:[#allocation5 + $0x68] sm:$0xf0] }
  0x17   :  { %184 = vmatpush.bf16.msra.mxu0 %v471_v3  ;;  %v463_v10 = vor.u32 %v554_v6, %v462_v5  ;;  %v467_v11 = vor.u32 %v553_v8, %v464_v9  ;;  %v454_v12 = vld [vmem:[#allocation5 + $0x50] sm:$0xf]  ;;  %v552_v13 = vld [vmem:[#allocation5 + $0x54] sm:$0xf0]  ;;  %v551_v14 = vld [vmem:[#allocation5 + $0x54] sm:$0xf] }
  0x18   :  { %197 = vmatpush.bf16.msra.mxu1 %v475_v7  ;;  %v456_v15 = vld [vmem:[#allocation5 + $0x58] sm:$0xf0]  ;;  %v455_v16 = vor.u32 %v552_v13, %v454_v12  ;;  %v446_v18 = vld [vmem:[#allocation5 + $0x40] sm:$0xf]  ;;  %v550_v19 = vld [vmem:[#allocation5 + $0x44] sm:$0xf0] }
  0x19   :  { %v459_v17 = vor.u32 %v551_v14, %v456_v15  ;;  %v549_v20 = vld [vmem:[#allocation5 + $0x44] sm:$0xf]  ;;  %v448_v21 = vld [vmem:[#allocation5 + $0x48] sm:$0xf0]  ;;  %v447_v22 = vor.u32 %v550_v19, %v446_v18  ;;  %v564_v23 = vld [vmem:[#allocation8 + $0x38] sm:$0xff]  ;;  %s400_s18 = sshll.u32 %s777_s5, 4  ;;  %s401_s18 = int_to_ptr.hbm [resolvable:$true] %s400_s18 }
  0x1a   :  { %v572_v24 = vld [vmem:[#allocation8 + $0x78] sm:$0xff]  ;;  %v451_v25 = vor.u32 %v549_v20, %v448_v21  ;;  %v438_v26 = vld [vmem:[#allocation5 + $0x30] sm:$0xf]  ;;  %v547_v28 = vld [vmem:[#allocation5 + $0x34] sm:$0xf]  ;;  %346 = vmatpush.bf16.msra.mxu2 %v564_v23 }
  0x1b   :  { %185 = vmatpush.bf16.msra.mxu0 %v463_v10  ;;  %v548_v27 = vld [vmem:[#allocation5 + $0x34] sm:$0xf0]  ;;  %v440_v29 = vld [vmem:[#allocation5 + $0x38] sm:$0xf0]  ;;  %359 = vmatpush.bf16.msra.mxu3 %v572_v24  ;;  %v430_v34 = vld [vmem:[#allocation5 + $0x20] sm:$0xf] }
  0x1c   :  { %198 = vmatpush.bf16.msra.mxu1 %v467_v11  ;;  %v563_v30 = vld [vmem:[#allocation8 + $0x30] sm:$0xff]  ;;  %v439_v32 = vor.u32 %v548_v27, %v438_v26  ;;  %v443_v33 = vor.u32 %v547_v28, %v440_v29  ;;  %v546_v35 = vld [vmem:[#allocation5 + $0x24] sm:$0xf0]  ;;  %v545_v36 = vld [vmem:[#allocation5 + $0x24] sm:$0xf] }
  0x1d   :  { %v571_v31 = vld [vmem:[#allocation8 + $0x70] sm:$0xff]  ;;  %v432_v37 = vld [vmem:[#allocation5 + $0x28] sm:$0xf0]  ;;  %v431_v40 = vor.u32 %v546_v35, %v430_v34  ;;  %v424_v45 = vld [vmem:[#allocation5 + $0x18] sm:$0xf0] }
  0x1e   :  { %347 = vmatpush.bf16.msra.mxu2 %v563_v30  ;;  %v562_v38 = vld [vmem:[#allocation8 + $0x28] sm:$0xff]  ;;  %v435_v41 = vor.u32 %v545_v36, %v432_v37  ;;  %v544_v43 = vld [vmem:[#allocation5 + $0x14] sm:$0xf0]  ;;  %v543_v44 = vld [vmem:[#allocation5 + $0x14] sm:$0xf] }
  0x1f   :  { %186 = vmatpush.bf16.msra.mxu0 %v455_v16  ;;  %360 = vmatpush.bf16.msra.mxu3 %v571_v31  ;;  %v570_v39 = vld [vmem:[#allocation8 + $0x68] sm:$0xff]  ;;  %v561_v46 = vld [vmem:[#allocation8 + $0x20] sm:$0xff]  ;;  %v427_v49 = vor.u32 %v543_v44, %v424_v45  ;;  %v560_v54 = vld [vmem:[#allocation8 + $0x18] sm:$0xff] }
  0x20   :  { %199 = vmatpush.bf16.msra.mxu1 %v459_v17  ;;  %v422_v42 = vld [vmem:[#allocation5 + $0x10] sm:$0xf]  ;;  %v569_v47 = vld [vmem:[#allocation8 + $0x60] sm:$0xff]  ;;  %v416_v53 = vld [vmem:[#allocation5 + $0x8] sm:$0xf0] }
  0x21   :  { %v423_v48 = vor.u32 %v544_v43, %v422_v42  ;;  %v414_v50 = vld [vmem:[#allocation5] sm:$0xf]  ;;  %v542_v51 = vld [vmem:[#allocation5 + $0x4] sm:$0xf0]  ;;  %v541_v52 = vld [vmem:[#allocation5 + $0x4] sm:$0xf] }
  0x22   :  { %348 = vmatpush.bf16.msra.mxu2 %v562_v38  ;;  %v568_v55 = vld [vmem:[#allocation8 + $0x58] sm:$0xff]  ;;  %v415_v56 = vor.u32 %v542_v51, %v414_v50  ;;  %v419_v58 = vor.u32 %v541_v52, %v416_v53  ;;  %v559_v59 = vld [vmem:[#allocation8 + $0x10] sm:$0xff]  ;;  %v558_v62 = vld [vmem:[#allocation8 + $0x8] sm:$0xff] }
  0x23   :  { %187 = vmatpush.bf16.msra.mxu0 %v447_v22  ;;  %361 = vmatpush.bf16.msra.mxu3 %v570_v39  ;;  %v80_v57 = vld [vmem:[#allocation2] sm:$0xf]  ;;  %v567_v60 = vld [vmem:[#allocation8 + $0x50] sm:$0xff]  ;;  %v566_v63 = vld [vmem:[#allocation8 + $0x48] sm:$0xff] }
  0x24   :  { %200 = vmatpush.bf16.msra.mxu1 %v451_v25  ;;  %v81_v61 = vpack.c.bf16 %v80_v57, %v80_v57  ;;  %v557_v0 = vld [vmem:[#allocation8] sm:$0xff]  ;;  %v98_v2 = vld [vmem:[#allocation7] sm:$0x3]  ;;  %v582_v15 = vld [vmem:[%s776_s4] ss:$0 sm:$0xff]  ;;  %s723_s4 = smov [#allocation10]  }
  0x25   :  { %v565_v1 = vld [vmem:[#allocation8 + $0x40] sm:$0xff]  ;;  %v100_v3 = vperm.slane %v98_v2, 0  ;;  %v101_v4 = vperm.slane %v98_v2, 1  ;;  %s398_s15 = sshll.u32 %s723_s4, 4  ;;  %s399_s15 = int_to_ptr.vmem [resolvable:$true] %s398_s15 }
  0x26   :  { %349 = vmatpush.bf16.msra.mxu2 %v561_v46 }
  0x27   :  { %188 = vmatpush.bf16.msra.mxu0 %v439_v32  ;;  %362 = vmatpush.bf16.msra.mxu3 %v569_v47 }
  0x28   :  { %201 = vmatpush.bf16.msra.mxu1 %v443_v33 }
  0x2a   :  { %350 = vmatpush.bf16.msra.mxu2 %v560_v54 }
  0x2b   :  { %189 = vmatpush.bf16.msra.mxu0 %v431_v40  ;;  %363 = vmatpush.bf16.msra.mxu3 %v568_v55 }
  0x2c   :  { %202 = vmatpush.bf16.msra.mxu1 %v435_v41 }
  0x2e   :  { %351 = vmatpush.bf16.msra.mxu2 %v559_v59 }
  0x2f   :  { %190 = vmatpush.bf16.msra.mxu0 %v423_v48  ;;  %364 = vmatpush.bf16.msra.mxu3 %v567_v60 }
  0x30   :  { %203 = vmatpush.bf16.msra.mxu1 %v427_v49 }
  0x32   :  { %352 = vmatpush.bf16.msra.mxu2 %v558_v62 }
  0x33   :  { %191 = vmatpush.bf16.msra.mxu0 %v415_v56  ;;  %365 = vmatpush.bf16.msra.mxu3 %v566_v63 }
  0x34   :  { %204 = vmatpush.bf16.msra.mxu1 %v419_v58 }
  0x36   :  { %192 = vmatmul.bf16.vlgmr.msra.gmra.mxu0 %v81_v61  ;;  %353 = vmatpush.bf16.msra.mxu2 %v557_v0 }
  0x37   :  { %205 = vmatmul.bf16.vlgmr.msra.gmra.mxu1 %v81_v61  ;;  %366 = vmatpush.bf16.msra.mxu3 %v565_v1 }
  0xb3   :  { %v193_v5 = vpop.f32.mrf.mxu0 }
  0xb4   :  { %v194_v6 = vadd.f32 %v193_v5, %v100_v3  ;;  %v206_v7 = vpop.f32.mrf.mxu1 }
  0xb5   :  { %v207_v8 = vadd.f32 %v206_v7, %v101_v4 }
  0xb6   :  { %v210_v9 = vmax.f32 %v194_v6, 0.0 }
  0xb7   :  { %v211_v10 = vmax.f32 %v207_v8, 0.0 }
  0xb8   :  { %v212_v11 = vpack.c.bf16 %v210_v9, %v210_v9 }
  0xb9   :  { %v213_v12 = vpack.c.bf16 %v211_v10, %v211_v10 }
  0xba   :  { %354 = vmatmul.bf16.vlgmr.msra.gmra.mxu2 %v212_v11 }
  0xbb   :  { %367 = vmatmul.bf16.vlgmr.msra.gmra.mxu3 %v213_v12  ;;  %v195_v13 = vpop.f32.mrf.mxu0 }
  0xbc   :  { %v208_v14 = vpop.f32.mrf.mxu1 }
 0x13d   :  { %v355_v16 = vpop.f32.mrf.mxu2 }
 0x13e   :  { %v356_v17 = vadd.f32 %v582_v15, %v355_v16  ;;  %v368_v18 = vpop.f32.mrf.mxu3 }
 0x140   :  { %v369_v19 = vadd.f32 %v368_v18, %v356_v17 }
 0x142   :  { %v540_v20 = vmul.f32 -1.442695, %v369_v19 }
 0x144   :  { %583 = vpow2.f32 %v540_v20 }
 0x145   :  { %v357_v21 = vpop.f32.mrf.mxu2 }
 0x146   :  { %v370_v22 = vpop.f32.mrf.mxu3 }
 0x14a   :  { %v584_v23 = vpop.eup %583 }
 0x14b   :  { %v375_v24 = vadd.f32 1.0, %v584_v23 }
 0x14d   :  { %585 = vrcp.f32 %v375_v24  ;;  %v387_v28 = vand.u32 2147483648, %v375_v24  ;;  %v385_v30 = vand.u32 2147483647, %v375_v24  ;;  %vm381_vm1 = vweird.f32 %v375_v24 }
 0x14f   :  { %v388_v32 = vor.u32 1.1754944e-38, %v387_v28  ;;  %vm386_vm3 = vcmp.eq.f32.partialorder %v385_v30, 8.507059e+37 }
 0x153   :  { %v586_v25 = vpop.eup %585 }
 0x154   :  { %v377_v26 = vmul.f32 %v586_v25, %v375_v24  ;;  %vm382_vm0 = vweird.f32 %v586_v25 }
 0x155   :  { %vm383_vm2 = vmor %vm381_vm1, %vm382_vm0 }
 0x156   :  { %v378_v27 = vsub.f32 1.0, %v377_v26 }
 0x158   :  { %v379_v29 = vmul.f32 %v586_v25, %v378_v27 }
 0x15a   :  { %v380_v31 = vadd.f32 %v586_v25, %v379_v29 }
 0x15c   :  { %v384_v33 = vsel %vm383_vm2, %v586_v25, %v380_v31 }
 0x15d   :  { %v389_v34 = vsel %vm386_vm3, %v388_v32, %v384_v33 }
 0x15e   :  { %v391_v35 = vpack.c.bf16 %v389_v34, %v389_v34 }
 0x160   :  { %392 = vst [vmem:[#allocation10] sm:$0x3] %v391_v35 }
 0x161   :  { %403 = dma.vmem_to_hbm [thread:$0]  %s399_s15, 32, %s401_s18, [#allocation4]  }
 0x162   :  { %713 = dma.done.wait [#allocation4], 32  }
 0x163   :  { %714 = vsyncadd [#allocation4], 4294967264 }
 0x164   :  { %408 = vsyncpa [#allocation3], 1 }
 0x165   :  { %409 = vsyncpa [#allocation6], 1 }
 0x166   :  { %410 = vsyncpa [#allocation9], 1 }
 0x167   :  { %411 = vsyncpa [#allocation4], 1 }

</bundles_post_ra>
